<compile_context>
chip_gen: v7x
topology: tpu7x:2x2x1
jax: 0.10.0
libtpu: 0.0.40
codegen_flags: <defaults>
</compile_context>

<pallas_src>
import functools

import jax
import jax.numpy as jnp
from jax.experimental import pallas as pl
from jax.experimental.pallas import tpu as pltpu


def _round_up(x, m):
    return ((x + m - 1) // m) * m


# ---------------------------------------------------------------------------
# Kernel
# ---------------------------------------------------------------------------
def vae_classifier_kernel(x_ref, w_ref, b_ref, o_ref, *, d_in_p, pw, nc_pad):
    """One batch tile of the fused (folded) MLP.

    x_ref : (TB, d_in_p)            input tile (native dtype)
    w_ref : (d_in_p + 3*pw, pw)     packed, zero-padded bf16 weights
    b_ref : (8, pw)                 f32 biases (rows 0..3 = b1..b4)
    o_ref : (TB, nc_pad)            narrow f32 logits
    """
    o1 = d_in_p          # end of W1 rows
    o2 = o1 + pw         # end of W2 rows
    o3 = o2 + pw         # end of W3 rows (folded fc_mu + classifier[0])
    o4 = o3 + pw         # end of W4 rows

    # encoder layer 1: Linear -> ReLU      (bf16 operands, f32 accumulate)
    h = jnp.dot(x_ref[...].astype(jnp.bfloat16), w_ref[0:o1, :],
                preferred_element_type=jnp.float32)
    h = jnp.maximum(h + b_ref[0:1, :], 0.0)

    # encoder layer 2: Linear -> ReLU
    h = jnp.dot(h.astype(jnp.bfloat16), w_ref[o1:o2, :],
                preferred_element_type=jnp.float32)
    h = jnp.maximum(h + b_ref[1:2, :], 0.0)

    # folded (fc_mu @ classifier[0]) -> ReLU
    h = jnp.dot(h.astype(jnp.bfloat16), w_ref[o2:o3, :],
                preferred_element_type=jnp.float32)
    h = jnp.maximum(h + b_ref[2:3, :], 0.0)

    # classifier[2]: final Linear; keep only the narrow logit lanes.
    logits = jnp.dot(h.astype(jnp.bfloat16), w_ref[o3:o4, :],
                     preferred_element_type=jnp.float32)
    logits = logits + b_ref[3:4, :]
    o_ref[...] = logits[:, :nc_pad].astype(o_ref.dtype)


# ---------------------------------------------------------------------------
# Host-side packing (done once, outside the forward pass)
# ---------------------------------------------------------------------------
def pack_params(p, d_in, hidden, latent, num_classes):
    """Fold fc_mu into classifier[0]; pack weights (bf16) + biases (f32)."""
    del latent  # folded away
    pw = _round_up(max(hidden, 64, num_classes), 128)  # common padded width
    d_in_p = _round_up(d_in, 16)                        # bf16 sublane pack = 16

    # Exact fold (computed in f32): no activation between fc_mu and classifier[0].
    w_mu_c1 = p["w_mu"] @ p["w_c1"]               # (hidden, 64)
    b_mu_c1 = p["b_mu"] @ p["w_c1"] + p["b_c1"]   # (1, 64)

    def pad_w(w, rows):
        buf = jnp.zeros((rows, pw), jnp.float32)
        return buf.at[: w.shape[0], : w.shape[1]].set(w.astype(jnp.float32))

    w1 = pad_w(p["w_e1"], d_in_p)   # (d_in_p, pw)
    w2 = pad_w(p["w_e2"], pw)       # (pw, pw)
    w3 = pad_w(w_mu_c1, pw)         # (pw, pw)
    w4 = pad_w(p["w_c2"], pw)       # (pw, pw)
    packed_w = jnp.concatenate([w1, w2, w3, w4], axis=0).astype(jnp.bfloat16)

    biases = jnp.zeros((8, pw), jnp.float32)
    biases = biases.at[0, : hidden].set(p["b_e1"][0])
    biases = biases.at[1, : hidden].set(p["b_e2"][0])
    biases = biases.at[2, : 64].set(b_mu_c1[0])
    biases = biases.at[3, : num_classes].set(p["b_c2"][0])

    meta = dict(d_in_p=d_in_p, pw=pw, num_classes=num_classes,
                nc_pad=_round_up(num_classes, 8))
    return packed_w, biases, meta


# ---------------------------------------------------------------------------
# Batch-tile chooser
# ---------------------------------------------------------------------------
def _pick_tb(b8, max_tile):
    """b8: batch rounded up to a multiple of 8.  Returns a multiple-of-8 tile.

    Prefers (a) >= 2 grid steps when the batch allows it (v7x megacore sharding)
    and (b) a divisor of b8 (no host-side row padding of x)."""
    max_tile = max(8, (max_tile // 8) * 8)
    if b8 <= max_tile:
        if b8 >= 16 and (b8 // 2) % 8 == 0:
            return b8 // 2            # 2 grid steps; extra step cost is ~0.35us
        return b8
    t = max_tile
    while t >= max(8, max_tile // 4):  # don't accept pathologically small tiles
        if b8 % t == 0:
            return t
        t -= 8
    return max_tile                    # fall back to padded batch


# ---------------------------------------------------------------------------
# Wrapper
# ---------------------------------------------------------------------------
def vae_classifier_forward(x, packed_w, biases, meta, *,
                           max_batch_tile=4096, vmem_limit_bytes=None):
    """x: (B, D_in) in its native dtype. Returns (B, num_classes) f32 logits.

    max_batch_tile=4096 fits comfortably in every generation's default scoped
    VMEM (incl. v5e's 16 MiB); pass vmem_limit_bytes to push it higher."""
    B, d_in = x.shape
    d_in_p = meta["d_in_p"]
    pw = meta["pw"]
    nc_pad = meta["nc_pad"]
    num_classes = meta["num_classes"]

    b8 = _round_up(max(B, 1), 8)
    tb = _pick_tb(b8, max_batch_tile)
    b_pad = _round_up(b8, tb)

    # Only pad when required; never upcast x in the wrapper.
    if (b_pad, d_in_p) != (B, d_in):
        x_in = jnp.zeros((b_pad, d_in_p), x.dtype).at[:B, :d_in].set(x)
    else:
        x_in = x

    n_rows = packed_w.shape[0]
    grid = (b_pad // tb,)

    kernel = functools.partial(vae_classifier_kernel,
                               d_in_p=d_in_p, pw=pw, nc_pad=nc_pad)

    out = pl.pallas_call(
        kernel,
        out_shape=jax.ShapeDtypeStruct((b_pad, nc_pad), jnp.float32),
        grid_spec=pltpu.PrefetchScalarGridSpec(
            num_scalar_prefetch=0,
            grid=grid,
            in_specs=[
                # x: follows the batch tile
                pl.BlockSpec((tb, d_in_p), lambda i: (i, 0)),
                # packed weights: constant block index -> resident in VMEM;
                # single-buffered (only one DMA ever happens).
                pl.BlockSpec((n_rows, pw), lambda i: (0, 0),
                             pipeline_mode=pl.Buffered(1)),
                # f32 biases: tiny, resident, single-buffered.
                pl.BlockSpec((8, pw), lambda i: (0, 0),
                             pipeline_mode=pl.Buffered(1)),
            ],
            out_specs=pl.BlockSpec((tb, nc_pad), lambda i: (i, 0)),
        ),
        compiler_params=pltpu.CompilerParams(
            dimension_semantics=("parallel",),   # shard batch tiles on v7x megacore
            vmem_limit_bytes=vmem_limit_bytes,
        ),
    )(x_in, packed_w, biases)

    return out[:B, :num_classes]


# ---------------------------------------------------------------------------
# Reference + deterministic init
# ---------------------------------------------------------------------------
def init_params(key, d_in, hidden, latent, num_classes):
    """Deterministic synthetic parameters (PyTorch Linear shapes, pre-transposed)."""
    ks = jax.random.split(key, 10)

    def lin(kw, kb, fan_in, fan_out):
        bound = 1.0 / jnp.sqrt(jnp.float32(fan_in))
        w = jax.random.uniform(kw, (fan_in, fan_out), jnp.float32, -bound, bound)
        b = jax.random.uniform(kb, (1, fan_out), jnp.float32, -bound, bound)
        return w, b

    w_e1, b_e1 = lin(ks[0], ks[1], d_in, hidden)
    w_e2, b_e2 = lin(ks[2], ks[3], hidden, hidden)
    w_mu, b_mu = lin(ks[4], ks[5], hidden, latent)
    w_c1, b_c1 = lin(ks[6], ks[7], latent, 64)
    w_c2, b_c2 = lin(ks[8], ks[9], 64, num_classes)

    return dict(
        w_e1=w_e1, b_e1=b_e1,
        w_e2=w_e2, b_e2=b_e2,
        w_mu=w_mu, b_mu=b_mu,
        w_c1=w_c1, b_c1=b_c1,
        w_c2=w_c2, b_c2=b_c2,
    )


def reference_forward(x, p):
    """Pure-JAX f32 reference of the original (unfolded) forward pass."""
    h = jnp.maximum(x @ p["w_e1"] + p["b_e1"], 0.0)
    h = jnp.maximum(h @ p["w_e2"] + p["b_e2"], 0.0)
    mu = h @ p["w_mu"] + p["b_mu"]
    c = jnp.maximum(mu @ p["w_c1"] + p["b_c1"], 0.0)
    return c @ p["w_c2"] + p["b_c2"]


if __name__ == "__main__":
    # Small shapes consistent with the module: tabular input (B, D_in).
    B, D_IN, HIDDEN, LATENT, NUM_CLASSES = 2, 16, 32, 8, 4

    key = jax.random.PRNGKey(0)
    k_x, k_p = jax.random.split(key)
    x = jax.random.normal(k_x, (B, D_IN), dtype=jnp.float32)
    params = init_params(k_p, D_IN, HIDDEN, LATENT, NUM_CLASSES)

    packed_w, biases, meta = pack_params(params, D_IN, HIDDEN, LATENT, NUM_CLASSES)

    out = vae_classifier_forward(x, packed_w, biases, meta)
    out = jax.block_until_ready(out)

    ref = reference_forward(x, params)
    assert out.shape == (B, NUM_CLASSES)
    # bf16 MXU operands with f32 accumulation -> relaxed tolerance vs f32 reference.
    assert jnp.allclose(out, ref, atol=3e-2, rtol=3e-2), "mismatch vs JAX reference"

    print("KERNEL_OK")
</pallas_src>

<mosaic_0001>
module attributes {stable_mosaic.version = 11 : i64} {
  func.func @vae_classifier_kernel(%arg0: i32, %arg1: memref<8x16xf32, #tpu.memory_space<vmem>>, %arg2: memref<400x128xbf16, #tpu.memory_space<vmem>>, %arg3: memref<8x128xf32, #tpu.memory_space<vmem>>, %arg4: memref<8x8xf32, #tpu.memory_space<vmem>>) attributes {dimension_semantics = [#tpu.dimension_semantics<parallel>], iteration_bounds = array<i64: 1>, scalar_prefetch = 0 : i64, scratch_operands = 0 : i64, tpu.core_type = #tpu.core_type<tc>, window_params = [{transform_indices = @transform_0, window_bounds = array<i64: 8, 16>}, {pipeline_mode = #tpu.pipeline_mode<synchronous>, transform_indices = @transform_1, window_bounds = array<i64: 400, 128>}, {pipeline_mode = #tpu.pipeline_mode<synchronous>, transform_indices = @transform_2, window_bounds = array<i64: 8, 128>}, {transform_indices = @transform_3, window_bounds = array<i64: 8, 8>}]} {
    %c0 = arith.constant 0 : index
    %c0_0 = arith.constant 0 : index
    %0 = vector.load %arg1[%c0, %c0_0] : memref<8x16xf32, #tpu.memory_space<vmem>>, vector<8x16xf32>
    %1 = arith.truncf %0 : vector<8x16xf32> to vector<8x16xbf16>
    %c0_1 = arith.constant 0 : index
    %c0_2 = arith.constant 0 : index
    %2 = vector.load %arg2[%c0_1, %c0_2] : memref<400x128xbf16, #tpu.memory_space<vmem>>, vector<16x128xbf16>
    %cst = arith.constant dense<0.000000e+00> : vector<8x128xf32>
    %3 = tpu.matmul %1, %2, %cst {dimension_numbers = #tpu.dot_dimension_numbers<[1], [0], [0], [1], [0, 0, 1, 1], [], []>} : vector<8x16xbf16>, vector<16x128xbf16>, vector<8x128xf32> -> vector<8x128xf32>
    %c0_3 = arith.constant 0 : index
    %c0_4 = arith.constant 0 : index
    %4 = vector.load %arg3[%c0_3, %c0_4] : memref<8x128xf32, #tpu.memory_space<vmem>>, vector<1x128xf32>
    %5 = vector.broadcast %4 : vector<1x128xf32> to vector<8x128xf32>
    %6 = arith.addf %3, %5 : vector<8x128xf32>
    %cst_5 = arith.constant 0.000000e+00 : f32
    %7 = vector.broadcast %cst_5 : f32 to vector<8x128xf32>
    %8 = arith.maximumf %6, %7 : vector<8x128xf32>
    %9 = arith.truncf %8 : vector<8x128xf32> to vector<8x128xbf16>
    %c16 = arith.constant 16 : index
    %c0_6 = arith.constant 0 : index
    %10 = vector.load %arg2[%c16, %c0_6] : memref<400x128xbf16, #tpu.memory_space<vmem>>, vector<128x128xbf16>
    %cst_7 = arith.constant dense<0.000000e+00> : vector<8x128xf32>
    %11 = tpu.matmul %9, %10, %cst_7 {dimension_numbers = #tpu.dot_dimension_numbers<[1], [0], [0], [1], [0, 0, 1, 1], [], []>} : vector<8x128xbf16>, vector<128x128xbf16>, vector<8x128xf32> -> vector<8x128xf32>
    %c1 = arith.constant 1 : index
    %c0_8 = arith.constant 0 : index
    %12 = vector.load %arg3[%c1, %c0_8] : memref<8x128xf32, #tpu.memory_space<vmem>>, vector<1x128xf32>
    %13 = vector.broadcast %12 : vector<1x128xf32> to vector<8x128xf32>
    %14 = arith.addf %11, %13 : vector<8x128xf32>
    %cst_9 = arith.constant 0.000000e+00 : f32
    %15 = vector.broadcast %cst_9 : f32 to vector<8x128xf32>
    %16 = arith.maximumf %14, %15 : vector<8x128xf32>
    %17 = arith.truncf %16 : vector<8x128xf32> to vector<8x128xbf16>
    %c144 = arith.constant 144 : index
    %c0_10 = arith.constant 0 : index
    %18 = vector.load %arg2[%c144, %c0_10] : memref<400x128xbf16, #tpu.memory_space<vmem>>, vector<128x128xbf16>
    %cst_11 = arith.constant dense<0.000000e+00> : vector<8x128xf32>
    %19 = tpu.matmul %17, %18, %cst_11 {dimension_numbers = #tpu.dot_dimension_numbers<[1], [0], [0], [1], [0, 0, 1, 1], [], []>} : vector<8x128xbf16>, vector<128x128xbf16>, vector<8x128xf32> -> vector<8x128xf32>
    %c2 = arith.constant 2 : index
    %c0_12 = arith.constant 0 : index
    %20 = vector.load %arg3[%c2, %c0_12] : memref<8x128xf32, #tpu.memory_space<vmem>>, vector<1x128xf32>
    %21 = vector.broadcast %20 : vector<1x128xf32> to vector<8x128xf32>
    %22 = arith.addf %19, %21 : vector<8x128xf32>
    %cst_13 = arith.constant 0.000000e+00 : f32
    %23 = vector.broadcast %cst_13 : f32 to vector<8x128xf32>
    %24 = arith.maximumf %22, %23 : vector<8x128xf32>
    %25 = arith.truncf %24 : vector<8x128xf32> to vector<8x128xbf16>
    %c272 = arith.constant 272 : index
    %c0_14 = arith.constant 0 : index
    %26 = vector.load %arg2[%c272, %c0_14] : memref<400x128xbf16, #tpu.memory_space<vmem>>, vector<128x128xbf16>
    %cst_15 = arith.constant dense<0.000000e+00> : vector<8x128xf32>
    %27 = tpu.matmul %25, %26, %cst_15 {dimension_numbers = #tpu.dot_dimension_numbers<[1], [0], [0], [1], [0, 0, 1, 1], [], []>} : vector<8x128xbf16>, vector<128x128xbf16>, vector<8x128xf32> -> vector<8x128xf32>
    %c3 = arith.constant 3 : index
    %c0_16 = arith.constant 0 : index
    %28 = vector.load %arg3[%c3, %c0_16] : memref<8x128xf32, #tpu.memory_space<vmem>>, vector<1x128xf32>
    %29 = vector.broadcast %28 : vector<1x128xf32> to vector<8x128xf32>
    %30 = arith.addf %27, %29 : vector<8x128xf32>
    %31 = vector.extract_strided_slice %30 {offsets = [0, 0], sizes = [8, 8], strides = [1, 1]} : vector<8x128xf32> to vector<8x8xf32>
    %c0_17 = arith.constant 0 : index
    %c0_18 = arith.constant 0 : index
    %32 = vector.load %arg4[%c0_17, %c0_18] : memref<8x8xf32, #tpu.memory_space<vmem>>, vector<8x8xf32>
    tpu.vector_store %arg4[%c0_17, %c0_18], %31 {strides = array<i32>} : memref<8x8xf32, #tpu.memory_space<vmem>>, vector<8x8xf32>,
    return
  }
  func.func @transform_0(%arg0: i32) -> (i32, i32) {
    %c0_i32 = arith.constant 0 : i32
    %c0_i32_0 = arith.constant 0 : i32
    return %arg0, %c0_i32 : i32, i32
  }
  func.func @transform_1(%arg0: i32) -> (i32, i32) {
    %c0_i32 = arith.constant 0 : i32
    %c0_i32_0 = arith.constant 0 : i32
    %c0_i32_1 = arith.constant 0 : i32
    return %c0_i32, %c0_i32_0 : i32, i32
  }
  func.func @transform_2(%arg0: i32) -> (i32, i32) {
    %c0_i32 = arith.constant 0 : i32
    %c0_i32_0 = arith.constant 0 : i32
    %c0_i32_1 = arith.constant 0 : i32
    return %c0_i32, %c0_i32_0 : i32, i32
  }
  func.func @transform_3(%arg0: i32) -> (i32, i32) {
    %c0_i32 = arith.constant 0 : i32
    %c0_i32_0 = arith.constant 0 : i32
    return %arg0, %c0_i32 : i32, i32
  }
}

</mosaic_0001>

<bundles_post_ra>
// kernel: tpu_custom_call.1
= control target key start
LH: loop header
LB: loop body
LE: loop exit
PB: predicated region body
PF: predicated region fallthrough
CT: control target
= control target key end

     0   :  { %8 = vsyncpa [#allocation3], 0  ;;  %s824_s0 = inlined_call_operand.hbm [shape: f32[8,16], index: 0, kind: input, shape index: {}]   ;;  %s825_s1 = inlined_call_operand.hbm [shape: bf16[400,128], index: 1, kind: input, shape index: {}]   ;;  %s826_s2 = inlined_call_operand.hbm [shape: f32[8,128], index: 2, kind: input, shape index: {}]   ;;  %s827_s3 = inlined_call_operand.hbm [shape: f32[8,8], index: 3, kind: output, shape index: {}]  }
   0x1   :  { %9 = vsyncpa [#allocation6], 0 }
   0x2   :  { %10 = vsyncpa [#allocation4], 0  ;;  %s715_s12 = smov [#allocation5]   ;;  %s621_s16 = scalar_lea.hbm %s825_s1, 3200 }
   0x3   :  { %s26_s13 = sshll.u32 %s715_s12, 4  ;;  %p622_p0 = scmp.ne.s32.totalorder %s825_s1, %s621_s16  ;;  %s27_s13 = int_to_ptr.vmem [resolvable:$true] %s26_s13 }
   0x4   :  { %p625_p1 = scmp.lt.u32.totalorder %s621_s16, %s825_s1 }
   0x6   :  { %p627_p2 = pnand %p625_p1, %p622_p0 }
   0x8   :  { %630 = shalt.err (!%p627_p2)
}
   0x9   :  { %s631_s21 = scalar_lea.vmem %s27_s13, 3200  ;;  %p636_p4 = scmp.lt.s32.totalorder %s27_s13, %s27_s13 }
   0xa   :  { %p632_p3 = scmp.ne.s32.totalorder %s27_s13, %s631_s21  ;;  %p637_p5 = scmp.lt.s32.totalorder %s631_s21, %s631_s21 }
   0xc   :  { %p638_p6 = por %p637_p5, %p636_p4 }
   0xe   :  { %p639_p7 = pnand %p638_p6, %p632_p3 }
  0x10   :  { %642 = shalt.err (!%p639_p7)
}
  0x11   :  { %s716_s22 = smov 64   ;;  %s717_s23 = smov 4  }
  0x12   :  { %32 = dma.hbm_to_vmem [thread:$0]  %s825_s1, 3200, %s27_s13, [#allocation6], %s716_s22, %s716_s22, %s717_s23  }
  0x13   :  { %s718_s26 = smov [#allocation2]   ;;  %s719_s28 = smov [#allocation7]  }
  0x14   :  { %s17_s27 = sshll.u32 %s718_s26, 4  ;;  %s39_s29 = sshll.u32 %s719_s28, 4  ;;  %s18_s27 = int_to_ptr.vmem [resolvable:$true] %s17_s27  ;;  %s40_s29 = int_to_ptr.vmem [resolvable:$true] %s39_s29 }
  0x15   :  { %s643_s5 = scalar_lea.hbm %s824_s0, 128 }
  0x16   :  { %p644_p8 = scmp.ne.s32.totalorder %s824_s0, %s643_s5  ;;  %p647_p9 = scmp.lt.u32.totalorder %s643_s5, %s824_s0 }
  0x18   :  { %p649_p10 = pnand %p647_p9, %p644_p8 }
  0x1a   :  { %652 = shalt.err (!%p649_p10)
}
  0x1b   :  { %s653_s1 = scalar_lea.vmem %s18_s27, 128  ;;  %p658_p12 = scmp.lt.s32.totalorder %s18_s27, %s18_s27 }
  0x1c   :  { %p654_p11 = scmp.ne.s32.totalorder %s18_s27, %s653_s1  ;;  %p659_p13 = scmp.lt.s32.totalorder %s653_s1, %s653_s1 }
  0x1e   :  { %p660_p0 = por %p659_p13, %p658_p12 }
  0x20   :  { %p661_p1 = pnand %p660_p0, %p654_p11 }
  0x22   :  { %664 = shalt.err (!%p661_p1)
}
  0x23   :  { %20 = dma.hbm_to_vmem [thread:$0]  %s824_s0, 128, %s18_s27, [#allocation3]  }
  0x24   :  { %s665_s14 = scalar_lea.hbm %s826_s2, 128 }
  0x25   :  { %p666_p2 = scmp.ne.s32.totalorder %s826_s2, %s665_s14  ;;  %p669_p3 = scmp.lt.u32.totalorder %s665_s14, %s826_s2 }
  0x27   :  { %p671_p4 = pnand %p669_p3, %p666_p2 }
  0x29   :  { %674 = shalt.err (!%p671_p4)
}
  0x2a   :  { %s675_s19 = scalar_lea.vmem %s40_s29, 128  ;;  %p680_p6 = scmp.lt.s32.totalorder %s40_s29, %s40_s29 }
  0x2b   :  { %p676_p5 = scmp.ne.s32.totalorder %s40_s29, %s675_s19  ;;  %p681_p7 = scmp.lt.s32.totalorder %s675_s19, %s675_s19 }
  0x2d   :  { %p682_p8 = por %p681_p7, %p680_p6 }
  0x2f   :  { %p683_p9 = pnand %p682_p8, %p676_p5 }
  0x31   :  { %686 = shalt.err (!%p683_p9)
}
  0x32   :  { %42 = dma.hbm_to_vmem [thread:$0]  %s826_s2, 128, %s40_s29, [#allocation6]  }
  0x33   :  { %709 = dma.done.wait [#allocation3], 128  }
  0x34   :  { %710 = vsyncadd [#allocation3], 4294967168 }
  0x35   :  { %711 = dma.done.wait [#allocation6], 3328  }
  0x36   :  { %712 = vsyncadd [#allocation6], 4294963968  ;;  %v720_v0 = vmov 0.0   ;;  %vm721_vm0 = vmmov 0   ;;  %v596_v1 = vld [vmem:[#allocation5] sm:$0xff]   ;;  %v53_v2 = vld [vmem:[#allocation2] sm:$0xff] }
  0x37   :  { %522 = vmatprep.subr.bf16.mxu0 %v720_v0  ;;  %524 = vmatprep.mubr.msk.bf16.mxu0 %vm721_vm0, %v720_v0  ;;  %v54_v3 = vpack.c.bf16 %v53_v2, %v53_v2  ;;  %vm68_vm1 = vcmask 130048   ;;  %v597_v4 = vld [vmem:[#allocation5 + $0x8] sm:$0xff]   ;;  %v598_v5 = vld [vmem:[#allocation5 + $0x10] sm:$0xff]   ;;  %v599_v6 = vld [vmem:[#allocation5 + $0x18] sm:$0xff]   ;;  %s722_s2 = smov [#allocation8]   ;;  %vm445_vm2 = vcmask 64512  }
  0x38   :  { %528 = vmatprep.subr.bf16.mxu1 %v720_v0  ;;  %544 = vmatprep.mubr.msk.bf16.mxu1 %vm721_vm0, %v720_v0  ;;  %v600_v7 = vld [vmem:[#allocation5 + $0x20] sm:$0xff]   ;;  %v601_v8 = vld [vmem:[#allocation5 + $0x28] sm:$0xff]   ;;  %v602_v9 = vld [vmem:[#allocation5 + $0x30] sm:$0xff]   ;;  %s453_s21 = sshll.u32 %s722_s2, 4  ;;  %s454_s21 = int_to_ptr.vmem [resolvable:$true] %s453_s21 }
  0x39   :  { %523 = vmatpush3.bf16.msra.mxu0 %v596_v1  ;;  %529 = vmatpush3.bf16.msra.mxu1 %v597_v4  ;;  %v603_v10 = vld [vmem:[#allocation5 + $0x38] sm:$0xff]   ;;  %v604_v11 = vld [vmem:[#allocation5 + $0x40] sm:$0xff]   ;;  %v605_v12 = vld [vmem:[#allocation5 + $0x48] sm:$0xff]   ;;  %s687_s22 = scalar_lea.vmem %s454_s21, 128  ;;  %p692_p11 = scmp.lt.s32.totalorder %s454_s21, %s454_s21 }
  0x3a   :  { %548 = vmatprep.subr.bf16.mxu0 %v720_v0  ;;  %530 = vmatprep.subr.bf16.mxu1 %v720_v0  ;;  %v606_v13 = vld [vmem:[#allocation5 + $0x50] sm:$0xff]   ;;  %v607_v14 = vld [vmem:[#allocation5 + $0x58] sm:$0xff]   ;;  %v608_v15 = vld [vmem:[#allocation5 + $0x60] sm:$0xff]   ;;  %p688_p10 = scmp.ne.s32.totalorder %s454_s21, %s687_s22  ;;  %p693_p12 = scmp.lt.s32.totalorder %s687_s22, %s687_s22 }
  0x3b   :  { %v609_v16 = vld [vmem:[#allocation5 + $0x68] sm:$0xff]   ;;  %v610_v17 = vld [vmem:[#allocation5 + $0x70] sm:$0xff]   ;;  %v611_v26 = vld [vmem:[#allocation5 + $0x78] sm:$0xff]  }
  0x3c   :  { %525 = vmatmul.mubr.msk.bf16.vlgmr.msra.gmra.mrb[0].mxu0 %vm68_vm1, %v54_v3  ;;  %v463_v18 = vld [vmem:[#allocation7] ss:$0 sm:$0xff]  ;;  %v612_v27 = vld [vmem:[#allocation5 + $0x80] sm:$0xff]   ;;  %v614_v29 = vld [vmem:[#allocation5 + $0x90] sm:$0xff]   ;;  %p694_p13 = por %p693_p12, %p692_p11 }
  0x3d   :  { %564 = vmatprep.mubr.msk.bf16.mxu0 %vm721_vm0, %v720_v0  ;;  %531 = vmatpush3.bf16.msra.mxu1 %v598_v5  ;;  %v613_v28 = vld [vmem:[#allocation5 + $0x88] sm:$0xff]   ;;  %v615_v30 = vld [vmem:[#allocation5 + $0x98] sm:$0xff]   ;;  %v616_v31 = vld [vmem:[#allocation5 + $0xa0] sm:$0xff]  }
  0x3e   :  { %532 = vmatprep.subr.bf16.mxu1 %v720_v0  ;;  %549 = vmatpush3.bf16.msra.mxu0 %v605_v12  ;;  %v617_v32 = vld [vmem:[#allocation5 + $0xa8] sm:$0xff]   ;;  %v618_v33 = vld [vmem:[#allocation5 + $0xb0] sm:$0xff]   ;;  %v619_v42 = vld [vmem:[#allocation5 + $0xb8] sm:$0xff]   ;;  %p695_p0 = pnand %p694_p13, %p688_p10 }
  0x3f   :  { %550 = vmatprep.subr.bf16.mxu0 %v720_v0  ;;  %v466_v34 = vld [vmem:[#allocation7 + $0x1] ss:$0 sm:$0xff]  ;;  %v620_v43 = vld [vmem:[#allocation5 + $0xc0] sm:$0xff]   ;;  %v475_v44 = vld [vmem:[#allocation7 + $0x2] ss:$0 sm:$0xff] }
  0x40   :  { %v484_v52 = vld [vmem:[#allocation7 + $0x3] ss:$0 sm:$0xff] }
  0x41   :  { %533 = vmatpush3.bf16.msra.mxu1 %v599_v6 }
  0x42   :  { %534 = vmatprep.subr.bf16.mxu1 %v720_v0  ;;  %551 = vmatpush3.bf16.msra.mxu0 %v606_v13 }
  0x43   :  { %552 = vmatprep.subr.bf16.mxu0 %v720_v0 }
  0x45   :  { %535 = vmatpush3.bf16.msra.mxu1 %v600_v7 }
  0x46   :  { %536 = vmatprep.subr.bf16.mxu1 %v720_v0  ;;  %553 = vmatpush3.bf16.msra.mxu0 %v607_v14 }
  0x47   :  { %554 = vmatprep.subr.bf16.mxu0 %v720_v0 }
  0x49   :  { %537 = vmatpush3.bf16.msra.mxu1 %v601_v8 }
  0x4a   :  { %538 = vmatprep.subr.bf16.mxu1 %v720_v0  ;;  %555 = vmatpush3.bf16.msra.mxu0 %v608_v15 }
  0x4b   :  { %556 = vmatprep.subr.bf16.mxu0 %v720_v0 }
  0x4d   :  { %539 = vmatpush3.bf16.msra.mxu1 %v602_v9 }
  0x4e   :  { %540 = vmatprep.subr.bf16.mxu1 %v720_v0  ;;  %557 = vmatpush3.bf16.msra.mxu0 %v609_v16 }
  0x4f   :  { %558 = vmatprep.subr.bf16.mxu0 %v720_v0 }
  0x51   :  { %541 = vmatpush3.bf16.msra.mxu1 %v603_v10 }
  0x52   :  { %542 = vmatprep.subr.bf16.mxu1 %v720_v0  ;;  %559 = vmatpush3.bf16.msra.mxu0 %v610_v17 }
  0x53   :  { %560 = vmatprep.subr.bf16.mxu0 %v720_v0 }
  0x55   :  { %543 = vmatpush3.bf16.msra.mxu1 %v604_v11 }
  0x56   :  { %568 = vmatprep.subr.bf16.mxu1 %v720_v0  ;;  %561 = vmatpush3.bf16.msra.mxu0 %v611_v26 }
  0x57   :  { %562 = vmatprep.subr.bf16.mxu0 %v720_v0 }
  0x5a   :  { %563 = vmatpush3.bf16.msra.mxu0 %v612_v27 }
 0x10f   :  { %v106_v19 = vpop.f32.mrb[0].mxu0 }
 0x110   :  { %v107_v20 = vadd.f32 %v463_v18, %v106_v19  ;;  %v526_v21 = vpop.f32.mrb[1].mxu0 }
 0x111   :  { %v109_v22 = vpop.f32.mrb[2].mxu0 }
 0x112   :  { %v112_v23 = vmax.f32 %v107_v20, 0.0  ;;  %v527_v24 = vpop.f32.mrb[3].mxu0 }
 0x114   :  { %v113_v25 = vpack.c.bf16 %v112_v23, %v112_v23 }
 0x116   :  { %545 = vmatmul.mubr.bf16.vlgmr.msra.gmra.mrb[0].mxu1 %v113_v25 }
 0x117   :  { %584 = vmatprep.mubr.msk.bf16.mxu1 %vm721_vm0, %v720_v0  ;;  %569 = vmatpush3.bf16.msra.mxu1 %v613_v28 }
 0x118   :  { %570 = vmatprep.subr.bf16.mxu1 %v720_v0 }
 0x11b   :  { %571 = vmatpush3.bf16.msra.mxu1 %v614_v29 }
 0x11c   :  { %572 = vmatprep.subr.bf16.mxu1 %v720_v0 }
 0x11f   :  { %573 = vmatpush3.bf16.msra.mxu1 %v615_v30 }
 0x120   :  { %574 = vmatprep.subr.bf16.mxu1 %v720_v0 }
 0x123   :  { %575 = vmatpush3.bf16.msra.mxu1 %v616_v31 }
 0x124   :  { %576 = vmatprep.subr.bf16.mxu1 %v720_v0 }
 0x127   :  { %577 = vmatpush3.bf16.msra.mxu1 %v617_v32 }
 0x128   :  { %578 = vmatprep.subr.bf16.mxu1 %v720_v0 }
 0x12b   :  { %579 = vmatpush3.bf16.msra.mxu1 %v618_v33 }
 0x12c   :  { %580 = vmatprep.subr.bf16.mxu1 %v720_v0 }
 0x12f   :  { %581 = vmatpush3.bf16.msra.mxu1 %v619_v42 }
 0x130   :  { %582 = vmatprep.subr.bf16.mxu1 %v720_v0 }
 0x133   :  { %583 = vmatpush3.bf16.msra.mxu1 %v620_v43 }
 0x1e9   :  { %v217_v35 = vpop.f32.mrb[0].mxu1 }
 0x1ea   :  { %v218_v36 = vadd.f32 %v466_v34, %v217_v35  ;;  %v546_v37 = vpop.f32.mrb[1].mxu1 }
 0x1eb   :  { %v220_v38 = vpop.f32.mrb[2].mxu1 }
 0x1ec   :  { %v223_v39 = vmax.f32 %v218_v36, 0.0  ;;  %v547_v40 = vpop.f32.mrb[3].mxu1 }
 0x1ee   :  { %v224_v41 = vpack.c.bf16 %v223_v39, %v223_v39 }
 0x1f0   :  { %565 = vmatmul.mubr.bf16.vlgmr.msra.gmra.mrb[4].mxu0 %v224_v41 }
 0x2c3   :  { %v328_v45 = vpop.f32.mrb[4].mxu0 }
 0x2c4   :  { %v329_v46 = vadd.f32 %v475_v44, %v328_v45  ;;  %v566_v47 = vpop.f32.mrb[5].mxu0 }
 0x2c5   :  { %v331_v48 = vpop.f32.mrb[6].mxu0 }
 0x2c6   :  { %v334_v49 = vmax.f32 %v329_v46, 0.0  ;;  %v567_v50 = vpop.f32.mrb[7].mxu0 }
 0x2c8   :  { %v335_v51 = vpack.c.bf16 %v334_v49, %v334_v49 }
 0x2ca   :  { %585 = vmatmul.mubr.bf16.vlgmr.msra.gmra.mrb[4].mxu1 %v335_v51 }
 0x39d   :  { %v439_v53 = vpop.f32.mrb[4].mxu1 }
 0x39e   :  { %v440_v54 = vadd.f32 %v484_v52, %v439_v53  ;;  %v586_v55 = vpop.f32.mrb[5].mxu1 }
 0x39f   :  { %v442_v56 = vpop.f32.mrb[6].mxu1 }
 0x3a0   :  { %v587_v57 = vpop.f32.mrb[7].mxu1  ;;  %446 = vst.msk [vmem:[#allocation8] sm:$0xff] %vm445_vm2, %v440_v54 }
 0x3a1   :  { %698 = shalt.err (!%p695_p0)
}
 0x3a2   :  { %s699_s25 = scalar_lea.hbm %s827_s3, 128 }
 0x3a3   :  { %p700_p1 = scmp.ne.s32.totalorder %s827_s3, %s699_s25  ;;  %p703_p2 = scmp.lt.u32.totalorder %s699_s25, %s827_s3 }
 0x3a5   :  { %p705_p3 = pnand %p703_p2, %p700_p1 }
 0x3a7   :  { %708 = shalt.err (!%p705_p3)
}
 0x3a8   :  { %456 = dma.vmem_to_hbm [thread:$0]  %s454_s21, 128, %s827_s3, [#allocation4]  }
 0x3a9   :  { %713 = dma.done.wait [#allocation4], 128  }
 0x3aa   :  { %714 = vsyncadd [#allocation4], 4294967168 }
 0x3ab   :  { %460 = vsyncpa [#allocation3], 1 }
 0x3ac   :  { %461 = vsyncpa [#allocation6], 1 }
 0x3ad   :  { %462 = vsyncpa [#allocation4], 1 }

</bundles_post_ra>
